<compile_context>
chip_gen: v7x
topology: tpu7x:2x2x1
jax: 0.10.0
libtpu: 0.0.40
codegen_flags: <defaults>
</compile_context>

<pallas_src>
import functools

import jax
import jax.numpy as jnp
from jax import lax
from jax.experimental import pallas as pl
from jax.experimental.pallas import tpu as pltpu

_MIB = 1024 * 1024


def _vmem_capacity_bytes() -> int:
    """Physical VMEM per TensorCore; conservative 64 MiB (v7x) fallback."""
    try:
        info = pltpu.get_tpu_info()
        cap = getattr(info, "vmem_capacity_bytes", None)
        if cap:
            return int(cap)
    except Exception:
        pass
    return 64 * _MIB


def _round_down(v: int, m: int) -> int:
    return (v // m) * m


def _round_up(v: int, m: int) -> int:
    return -(-v // m) * m


# ----------------------------------------------------------------------------
# Path 1: zero-copy (aliased) kernel — only the src row moves (HBM -> HBM DMA).
# ----------------------------------------------------------------------------
def _slice_scatter_row0_inplace_kernel(x_hbm, src_hbm, o_hbm, sem):
    # o_hbm aliases x_hbm, so every untouched row already holds x's data.
    # DMA the (1, cols) src row directly HBM->HBM into row 0 of the output —
    # no VMEM staging, so the kernel uses (essentially) zero scoped VMEM.
    del x_hbm
    cp = pltpu.make_async_copy(src_hbm, o_hbm.at[0:1, :], sem)
    cp.start()
    cp.wait()


def slice_scatter_dim0_inplace(x: jax.Array, src: jax.Array) -> jax.Array:
    """slice_scatter(x, src, dim=0, start=0, end=1, step=1) via in-place row DMA.

    NOTE: this is only O(cols) HBM traffic when the caller donates x, e.g.
        jax.jit(slice_scatter_dim0_inplace, donate_argnums=(0,))(x, src)
    Without donation XLA inserts a defensive copy of x (correct, but then the
    tiled path `slice_scatter_dim0` is the better choice).
    """
    assert x.ndim == 2 and src.ndim == 2
    assert src.shape[0] == 1 and src.shape[1] == x.shape[1]
    assert x.dtype == src.dtype

    return pl.pallas_call(
        _slice_scatter_row0_inplace_kernel,
        out_shape=jax.ShapeDtypeStruct(x.shape, x.dtype),
        in_specs=[
            pl.BlockSpec(memory_space=pl.ANY),   # x stays in place (HBM)
            pl.BlockSpec(memory_space=pl.ANY),   # src stays in place (HBM)
        ],
        out_specs=pl.BlockSpec(memory_space=pl.ANY),   # out = aliased x
        scratch_shapes=[pltpu.SemaphoreType.DMA],
        input_output_aliases={0: 0},
    )(x, src)


# ----------------------------------------------------------------------------
# Path 2: out-of-place tiled copy (no donation required).
# ----------------------------------------------------------------------------
def _slice_scatter_rows_kernel(x_ref, src_ref, o_ref, *, fix_rows):
    x = x_ref[...]
    # Unconditional full-tile copy for every block (pure DMA/store bandwidth).
    o_ref[...] = x

    @pl.when(pl.program_id(0) == 0)
    def _():
        # Tiny, sublane-aligned fixup on the first row block only: overwrite the
        # first `fix_rows` rows with row 0 replaced by src.  Avoids a full-tile
        # int32 iota + select (VALU/vreg pressure on 8 MiB tiles) and avoids any
        # masked sub-(8,128) partial store.
        cols = x_ref.shape[-1]
        row_idx = lax.broadcasted_iota(jnp.int32, (fix_rows, cols), 0)
        o_ref[0:fix_rows, :] = jnp.where(row_idx == 0, src_ref[...],
                                         x[0:fix_rows, :])


def slice_scatter_dim0(x: jax.Array, src: jax.Array,
                       _tile_budget_bytes: int | None = None) -> jax.Array:
    """slice_scatter(x, src, dim=0, start=0, end=1, step=1), pipelined tiles."""
    assert x.ndim == 2 and src.ndim == 2
    assert src.shape[0] == 1 and src.shape[1] == x.shape[1]
    assert x.dtype == src.dtype

    rows, cols = x.shape
    itemsize = jnp.dtype(x.dtype).itemsize
    row_bytes = cols * itemsize

    # Per-generation tile budget: min(8 MiB, VMEM/8).  Double-buffered in + out
    # is then <= 32 MiB live, which fits v7x's 64 MiB VMEM and is trivial on
    # v5e/v6e's 128 MiB.  Set vmem_limit_bytes explicitly so v5e's 16 MiB
    # default scoped limit never rejects the tiles.
    vmem_cap = _vmem_capacity_bytes()
    tile_budget = min(8 * _MIB, max(_MIB, vmem_cap // 8))
    if _tile_budget_bytes is not None:           # test hook for the 2-D fallback
        tile_budget = int(_tile_budget_bytes)
    vmem_limit = int(max(32 * _MIB, min(vmem_cap * 3 // 4, 6 * tile_budget)))
    vmem_limit = min(vmem_limit, vmem_cap)

    # Sublane packing granule: 8 rows (f32), 16 (bf16), 32 (int8/fp8).
    sub = max(8, 32 // itemsize)

    if sub * row_bytes <= tile_budget or rows <= sub:
        # ---------------- row-only tiling (common case) ----------------
        tr_cap = max(sub, _round_down(tile_budget // max(1, row_bytes), 32))
        tr = rows if rows <= tr_cap else tr_cap
        if rows >= 64 and tr >= rows:
            # Split a single-block grid into >=2 row blocks so both of v7x's
            # TensorCores get work; harmless on single-TC v5e/v6e.
            tr = min(tr, _round_up(_round_up(rows, 2) // 2, 32))
        grid = (pl.cdiv(rows, tr),)
        in_specs = [
            pl.BlockSpec((tr, cols), lambda i: (i, 0)),
            pl.BlockSpec((1, cols), lambda i: (0, 0)),   # src resident
        ]
        out_specs = pl.BlockSpec((tr, cols), lambda i: (i, 0))
        dim_sem = ("parallel",)
    else:
        # ------- wide-row fallback: 2-D (row, col) tiling, lane dim %128 -------
        tr = rows if rows < 32 else 32
        tc_cap = max(128, _round_down(tile_budget // (max(tr, 1) * itemsize), 128))
        tc = cols if cols <= tc_cap else tc_cap
        if tc < cols:
            tr_cap = max(32, _round_down(tile_budget // (tc * itemsize), 32))
            tr = rows if rows <= tr_cap else tr_cap
        grid = (pl.cdiv(rows, tr), pl.cdiv(cols, tc))
        in_specs = [
            pl.BlockSpec((tr, tc), lambda i, j: (i, j)),
            pl.BlockSpec((1, tc), lambda i, j: (0, j)),
        ]
        out_specs = pl.BlockSpec((tr, tc), lambda i, j: (i, j))
        dim_sem = ("parallel", "parallel")

    fix_rows = min(tr, sub)
    kernel = functools.partial(_slice_scatter_rows_kernel, fix_rows=fix_rows)

    return pl.pallas_call(
        kernel,
        out_shape=jax.ShapeDtypeStruct(x.shape, x.dtype),
        grid=grid,
        in_specs=in_specs,
        out_specs=out_specs,
        compiler_params=pltpu.CompilerParams(
            dimension_semantics=dim_sem,
            vmem_limit_bytes=vmem_limit,
        ),
        cost_estimate=pl.CostEstimate(
            flops=0,
            transcendentals=0,
            bytes_accessed=2 * x.size * itemsize + src.size * itemsize,
        ),
    )(x, src)


if __name__ == "__main__":
    key = jax.random.PRNGKey(0)
    kx, ks, kx2, ks2, kx3, ks3 = jax.random.split(key, 6)

    # Case 1: tiny shape matching the torch-mlir e2e test (6, 8) / (1, 8).
    x = jax.random.normal(kx, (6, 8), dtype=jnp.float32)
    src = jax.random.normal(ks, (1, 8), dtype=jnp.float32)
    ref = x.at[0:1, :].set(src)

    out_tiled = jax.block_until_ready(slice_scatter_dim0(x, src))
    out_alias = jax.block_until_ready(slice_scatter_dim0_inplace(x, src))
    assert out_tiled.shape == x.shape and out_tiled.dtype == x.dtype
    assert jnp.array_equal(out_tiled, ref), "tiled kernel mismatch vs reference"
    assert jnp.array_equal(out_alias, ref), "aliased kernel mismatch vs reference"

    # Case 2: lane-dense shape exercising a multi-row-block grid + pl.when guard.
    x2 = jax.random.normal(kx2, (256, 256), dtype=jnp.float32)
    src2 = jax.random.normal(ks2, (1, 256), dtype=jnp.float32)
    ref2 = x2.at[0:1, :].set(src2)

    out2_tiled = jax.block_until_ready(slice_scatter_dim0(x2, src2))
    out2_alias = jax.block_until_ready(slice_scatter_dim0_inplace(x2, src2))
    assert jnp.array_equal(out2_tiled, ref2), "tiled kernel mismatch (multi-block)"
    assert jnp.array_equal(out2_alias, ref2), "aliased kernel mismatch (multi-block)"

    # Case 3: exercise the wide-row 2-D column-tiling fallback by forcing a tiny
    # tile budget (small shapes, same code path as cols*itemsize*sub > 8 MiB).
    x3 = jax.random.normal(kx3, (48, 1024), dtype=jnp.float32)
    src3 = jax.random.normal(ks3, (1, 1024), dtype=jnp.float32)
    ref3 = x3.at[0:1, :].set(src3)

    out3 = jax.block_until_ready(
        slice_scatter_dim0(x3, src3, _tile_budget_bytes=16 * 1024))
    assert jnp.array_equal(out3, ref3), "tiled kernel mismatch (column tiling)"

    print("KERNEL_OK")
</pallas_src>

<mosaic_0001>
module attributes {stable_mosaic.version = 11 : i64} {
  func.func @_slice_scatter_rows_kernel(%arg0: i32, %arg1: memref<6x8xf32, #tpu.memory_space<vmem>>, %arg2: memref<1x8xf32, #tpu.memory_space<vmem>>, %arg3: memref<6x8xf32, #tpu.memory_space<vmem>>) attributes {dimension_semantics = [#tpu.dimension_semantics<parallel>], iteration_bounds = array<i64: 1>, scalar_prefetch = 0 : i64, scratch_operands = 0 : i64, tpu.core_type = #tpu.core_type<tc>, window_params = [{transform_indices = @transform_0, window_bounds = array<i64: 6, 8>}, {pipeline_mode = #tpu.pipeline_mode<synchronous>, transform_indices = @transform_1, window_bounds = array<i64: 1, 8>}, {transform_indices = @transform_2, window_bounds = array<i64: 6, 8>}]} {
    %c0 = arith.constant 0 : index
    %c0_0 = arith.constant 0 : index
    %0 = vector.load %arg1[%c0, %c0_0] : memref<6x8xf32, #tpu.memory_space<vmem>>, vector<6x8xf32>
    %c0_1 = arith.constant 0 : index
    %c0_2 = arith.constant 0 : index
    %1 = vector.load %arg3[%c0_1, %c0_2] : memref<6x8xf32, #tpu.memory_space<vmem>>, vector<6x8xf32>
    tpu.vector_store %arg3[%c0_1, %c0_2], %0 {strides = array<i32>} : memref<6x8xf32, #tpu.memory_space<vmem>>, vector<6x8xf32>,
    %c0_i32 = arith.constant 0 : i32
    %2 = arith.cmpi eq, %arg0, %c0_i32 : i32
    %3 = arith.extui %2 : i1 to i32
    %c0_i32_3 = arith.constant 0 : i32
    %4 = arith.cmpi ne, %3, %c0_i32_3 : i32
    scf.if %4 {
      %5 = tpu.iota {dimensions = array<i32: 0>} : vector<6x8xi32>
      %c0_i32_4 = arith.constant 0 : i32
      %6 = vector.broadcast %c0_i32_4 : i32 to vector<6x8xi32>
      %7 = arith.cmpi eq, %5, %6 : vector<6x8xi32>
      %c0_5 = arith.constant 0 : index
      %c0_6 = arith.constant 0 : index
      %8 = vector.load %arg2[%c0_5, %c0_6] : memref<1x8xf32, #tpu.memory_space<vmem>>, vector<1x8xf32>
      %9 = vector.shape_cast %8 : vector<1x8xf32> to vector<1x8xf32>
      %10 = vector.broadcast %9 : vector<1x8xf32> to vector<6x8xf32>
      %11 = arith.select %7, %10, %0 : vector<6x8xi1>, vector<6x8xf32>
      %c0_7 = arith.constant 0 : index
      %c0_8 = arith.constant 0 : index
      %12 = vector.load %arg3[%c0_7, %c0_8] : memref<6x8xf32, #tpu.memory_space<vmem>>, vector<6x8xf32>
      tpu.vector_store %arg3[%c0_7, %c0_8], %11 {strides = array<i32>} : memref<6x8xf32, #tpu.memory_space<vmem>>, vector<6x8xf32>,
    } else {
    }
    return
  }
  func.func @transform_0(%arg0: i32) -> (i32, i32) {
    %c0_i32 = arith.constant 0 : i32
    %c0_i32_0 = arith.constant 0 : i32
    return %arg0, %c0_i32 : i32, i32
  }
  func.func @transform_1(%arg0: i32) -> (i32, i32) {
    %c0_i32 = arith.constant 0 : i32
    %c0_i32_0 = arith.constant 0 : i32
    %c0_i32_1 = arith.constant 0 : i32
    return %c0_i32, %c0_i32_0 : i32, i32
  }
  func.func @transform_2(%arg0: i32) -> (i32, i32) {
    %c0_i32 = arith.constant 0 : i32
    %c0_i32_0 = arith.constant 0 : i32
    return %arg0, %c0_i32 : i32, i32
  }
}

</mosaic_0001>

<bundles_post_ra>
// kernel: tpu_custom_call.1
= control target key start
LH: loop header
LB: loop body
LE: loop exit
PB: predicated region body
PF: predicated region fallthrough
CT: control target
= control target key end

     0   :  { %7 = vsyncpa [#allocation3], 0  ;;  %s153_s0 = inlined_call_operand.hbm [shape: f32[6,8], index: 0, kind: input, shape index: {}]   ;;  %s154_s1 = inlined_call_operand.vmem [shape: f32[1,8], index: 1, kind: input, shape index: {}]   ;;  %s155_s2 = inlined_call_operand.hbm [shape: f32[6,8], index: 2, kind: output, shape index: {}]  }
   0x1   :  { %8 = vsyncpa [#allocation4], 0  ;;  %s109_s9 = smov [#allocation2]   ;;  %s61_s13 = scalar_lea.hbm %s153_s0, 128 }
   0x2   :  { %s15_s10 = sshll.u32 %s109_s9, 4  ;;  %p62_p0 = scmp.ne.s32.totalorder %s153_s0, %s61_s13  ;;  %s16_s10 = int_to_ptr.vmem [resolvable:$true] %s15_s10 }
   0x3   :  { %p65_p1 = scmp.lt.u32.totalorder %s61_s13, %s153_s0 }
   0x5   :  { %p67_p2 = pnand %p65_p1, %p62_p0 }
   0x7   :  { %70 = shalt.err (!%p67_p2)
}
   0x8   :  { %s71_s18 = scalar_lea.vmem %s16_s10, 128  ;;  %p76_p4 = scmp.lt.s32.totalorder %s16_s10, %s16_s10 }
   0x9   :  { %p72_p3 = scmp.ne.s32.totalorder %s16_s10, %s71_s18  ;;  %p77_p5 = scmp.lt.s32.totalorder %s71_s18, %s71_s18 }
   0xb   :  { %p78_p6 = por %p77_p5, %p76_p4 }
   0xd   :  { %p79_p7 = pnand %p78_p6, %p72_p3 }
   0xf   :  { %82 = shalt.err (!%p79_p7)
}
  0x10   :  { %18 = dma.hbm_to_vmem [thread:$0]  %s153_s0, 128, %s16_s10, [#allocation3]  }
  0x11   :  { %105 = dma.done.wait [#allocation3], 128  }
  0x12   :  { %106 = vsyncadd [#allocation3], 4294967168  ;;  %v31_v0 = vlaneseq  ;;  %s110_s21 = smov [#allocation5]   ;;  %vm25_vm0 = vcmask 62464   ;;  %v24_v2 = vld [vmem:[#allocation2] sm:$0x3f] }
  0x13   :  { %s49_s22 = sshll.u32 %s110_s21, 4  ;;  %v58_v3 = vld [vmem:[%s154_s1] ss:$0 sm:$0xff]  ;;  %26 = vst.msk [vmem:[#allocation5] sm:$0x3f] %vm25_vm0, %v24_v2  ;;  %s50_s22 = int_to_ptr.vmem [resolvable:$true] %s49_s22 }
  0x14   :  { %v32_v1 = vshrl.u32 %v31_v0, 7  ;;  %s83_s25 = scalar_lea.vmem %s50_s22, 128  ;;  %p88_p9 = scmp.lt.s32.totalorder %s50_s22, %s50_s22 }
  0x15   :  { %p84_p8 = scmp.ne.s32.totalorder %s50_s22, %s83_s25  ;;  %p89_p10 = scmp.lt.s32.totalorder %s83_s25, %s83_s25 }
  0x16   :  { %vm33_vm1 = vcmp.eq.s32.totalorder %v32_v1, 0 }
  0x17   :  { %v41_v4 = vsel %vm33_vm1, %v58_v3, %v24_v2  ;;  %p90_p11 = por %p89_p10, %p88_p9 }
  0x18   :  { %42 = vst.msk [vmem:[#allocation5] sm:$0x3f] %vm25_vm0, %v41_v4 }
  0x19   :  { %p91_p12 = pnand %p90_p11, %p84_p8 }
  0x1b   :  { %94 = shalt.err (!%p91_p12)
}
  0x1c   :  { %s95_s27 = scalar_lea.hbm %s155_s2, 128 }
  0x1d   :  { %p96_p13 = scmp.ne.s32.totalorder %s155_s2, %s95_s27  ;;  %p99_p0 = scmp.lt.u32.totalorder %s95_s27, %s155_s2 }
  0x1f   :  { %p101_p1 = pnand %p99_p0, %p96_p13 }
  0x21   :  { %104 = shalt.err (!%p101_p1)
}
  0x22   :  { %52 = dma.vmem_to_hbm [thread:$0]  %s50_s22, 128, %s155_s2, [#allocation4]  }
  0x23   :  { %107 = dma.done.wait [#allocation4], 128  }
  0x24   :  { %108 = vsyncadd [#allocation4], 4294967168 }
  0x25   :  { %56 = vsyncpa [#allocation3], 1 }
  0x26   :  { %57 = vsyncpa [#allocation4], 1 }

</bundles_post_ra>
